<compile_context>
chip_gen: v7x
topology: tpu7x:2x2x1
jax: 0.10.0
libtpu: 0.0.40
codegen_flags: <defaults>
</compile_context>

<pallas_src>
import functools

import jax
import jax.numpy as jnp
from jax.experimental import pallas as pl
from jax.experimental.pallas import tpu as pltpu


# ----------------------------- Pallas kernel --------------------------------
def glimpse_network_kernel(
    locs_ref,        # (TB, 2)               f32   (streamed)
    gflat_ref,       # (TB, S*S*C*G)         act   (streamed; dominant DMA)
    w_loc_ref,       # (2, loc_g)            f32   (resident, single-buffered)
    b_loc_ref,       # (1, loc_g)            f32
    w_g_ref,         # (S*S*C*G, glimpse_g)  act
    b_g_ref,         # (1, glimpse_g)        f32
    w_out_loc_ref,   # (loc_g, net)          act   (first rows of W_out)
    w_out_g_ref,     # (glimpse_g, net)      act   (remaining rows of W_out)
    b_out_ref,       # (1, net)              f32
    out_ref,         # (TB, net)             f32
):
    # Location branch on the VPU: a K=2 matmul would still pad to a full MXU
    # push, so express it as two broadcast multiply-adds instead (f32 — v5e's
    # VALU has no bf16 path). Runs in otherwise-idle VALU slots while the MXU
    # chews on the gflat matmul.
    locs = locs_ref[...]
    w_loc = w_loc_ref[...]
    loc_rep = (
        locs[:, 0:1] * w_loc[0:1, :]
        + locs[:, 1:2] * w_loc[1:2, :]
        + b_loc_ref[...]
    )
    loc_rep = jnp.maximum(loc_rep, 0.0)

    # Glimpse branch: the single big matmul. Operands arrive already in the
    # compute dtype (no per-step in-kernel casts); accumulation, bias-add and
    # ReLU stay in f32.
    g_rep = (
        jnp.dot(gflat_ref[...], w_g_ref[...], preferred_element_type=jnp.float32)
        + b_g_ref[...]
    )
    g_rep = jnp.maximum(g_rep, 0.0)

    # Output layer on cat([loc_rep, glimpse_rep]) == split-weight sum, then ReLU.
    # Only the tiny (TB, 32) intermediates get cast to the MXU operand dtype.
    mxu_dtype = w_out_g_ref.dtype
    out = (
        jnp.dot(loc_rep.astype(mxu_dtype), w_out_loc_ref[...],
                preferred_element_type=jnp.float32)
        + jnp.dot(g_rep.astype(mxu_dtype), w_out_g_ref[...],
                  preferred_element_type=jnp.float32)
        + b_out_ref[...]
    )
    out_ref[...] = jnp.maximum(out, 0.0)


# ------------------------------ tiling helpers --------------------------------
def _round_up(x, m):
    return (x + m - 1) // m * m


def _physical_vmem_bytes():
    try:
        return int(pltpu.get_tpu_info().vmem_capacity_bytes)
    except Exception:
        return 64 * 1024 * 1024  # conservative default (v7x per-TC VMEM)


def _choose_batch_tile(bp, row_bytes, *, max_tile=None,
                       target_bytes=1 << 20, min_steps=4):
    """Batch tile: per-step activation DMA ~>= target_bytes, grid >= min_steps
    (>= 2 steps per TensorCore on v7x), multiple of 8, and a divisor of bp so
    there are never padded tail blocks."""
    if bp <= 8:
        return bp
    tb = max(8, (target_bytes // max(row_bytes, 1)) // 8 * 8)
    tb = min(tb, max(8, (bp // min_steps) // 8 * 8), bp)
    if max_tile is not None:
        tb = min(tb, max(8, (int(max_tile) // 8) * 8))
    while bp % tb != 0:  # bp is a multiple of 8, so tb=8 always terminates this
        tb -= 8
    return tb


def _nbytes(x):
    return int(x.size) * jnp.dtype(x.dtype).itemsize


# ------------------------------- wrapper -------------------------------------
@functools.partial(jax.jit, static_argnames=("block_b",))
def glimpse_network_forward(locs, glimpses, params, *, block_b=None):
    """locs: (B, 2) f32; glimpses: (B, C*G, S, S) (NCHW).

    Activations are streamed in the same dtype as the big weights (params["w_g"]);
    pass params through prepare_params(..., jnp.bfloat16) to halve the dominant
    HBM stream on the MXU path.
    """
    B = glimpses.shape[0]
    act_dtype = params["w_g"].dtype
    locs = locs.astype(jnp.float32)
    # PyTorch Flatten: view(B, -1) on NCHW -> row-major C*H*W flatten. Cast
    # upstream of the kernel so the dominant stream is already in compute dtype.
    gflat = glimpses.reshape(B, -1).astype(act_dtype)
    U = gflat.shape[1]

    loc_g = params["w_loc"].shape[1]
    g_g = params["w_g"].shape[1]
    net = params["b_out"].shape[-1]

    act_itemsize = jnp.dtype(act_dtype).itemsize
    row_bytes = 2 * 4 + U * act_itemsize + net * 4  # locs + gflat + out per batch row

    if B % 8 == 0:
        bp, pad = B, 0
        tb = _choose_batch_tile(bp, row_bytes, max_tile=block_b)
    elif B <= 2048:
        # Full-extent block is legal for any B (block dim == array dim) and
        # avoids re-materializing gflat with jnp.pad.
        bp, pad, tb = B, 0, B
    else:
        # TODO(synk): for large ragged batches this jnp.pad re-materializes the
        # whole gflat; callers should prefer B % 8 == 0.
        bp = _round_up(B, 8)
        pad = bp - B
        tb = _choose_batch_tile(bp, row_bytes, max_tile=block_b)

    if pad:
        locs = jnp.pad(locs, ((0, pad), (0, 0)))
        gflat = jnp.pad(gflat, ((0, pad), (0, 0)))
    grid = (bp // tb,)

    # Advisory cost estimate so XLA can overlap this call with surrounding HLO.
    flops = 2 * bp * (U * g_g + loc_g * net + g_g * net) + 4 * bp * loc_g
    weight_bytes = sum(
        _nbytes(params[k])
        for k in ("w_loc", "b_loc", "w_g", "b_g", "w_out_loc", "w_out_g", "b_out")
    )
    bytes_accessed = bp * row_bytes + weight_bytes
    cost = pl.CostEstimate(
        flops=flops, transcendentals=0, bytes_accessed=bytes_accessed
    )

    # VMEM budget: single-buffered resident weights (unblocked VMEM specs) +
    # double-buffered streamed activation tiles. Raise the scoped limit only if
    # the smallest default (16 MiB on v5e) would not fit, and clamp to ~90% of
    # the chip's physical VMEM (v7x: 64 MiB per TC).
    act_tile_bytes = tb * row_bytes
    vmem_needed = weight_bytes + 2 * act_tile_bytes
    vmem_limit = None
    if vmem_needed > 16 * 1024 * 1024:
        phys = _physical_vmem_bytes()
        vmem_limit = min(int(1.2 * vmem_needed), int(0.9 * phys))
        # TODO(synk): if vmem_needed exceeds ~0.9*physical (huge unrolled_size),
        # switch to a K-axis grid over U with an f32 accumulator scratch instead
        # of holding all of w_g resident.

    resident = pl.BlockSpec(memory_space=pltpu.MemorySpace.VMEM)  # single buffer

    out = pl.pallas_call(
        glimpse_network_kernel,
        out_shape=jax.ShapeDtypeStruct((bp, net), jnp.float32),
        grid=grid,
        in_specs=[
            pl.BlockSpec((tb, 2), lambda i: (i, 0)),   # locs   (streamed)
            pl.BlockSpec((tb, U), lambda i: (i, 0)),   # gflat  (streamed)
            resident,                                  # w_loc
            resident,                                  # b_loc
            resident,                                  # w_g
            resident,                                  # b_g
            resident,                                  # w_out_loc
            resident,                                  # w_out_g
            resident,                                  # b_out
        ],
        out_specs=pl.BlockSpec((tb, net), lambda i: (i, 0)),
        compiler_params=pltpu.CompilerParams(
            dimension_semantics=("parallel",),
            vmem_limit_bytes=vmem_limit,
        ),
        cost_estimate=cost,
    )(
        locs,
        gflat,
        params["w_loc"],
        params["b_loc"],
        params["w_g"],
        params["b_g"],
        params["w_out_loc"],
        params["w_out_g"],
        params["b_out"],
    )
    if pad:
        out = out[:B]
    return out, glimpses


# --------------------------- parameter handling -------------------------------
def init_params(key, *, unrolled_size, loc_g_size, glimpse_g_size, glimpse_net_size):
    """Deterministic kaiming-normal weights (fan_in, gain=sqrt(2)), zero biases,
    matching GlimpseNetwork.init() for g_rep_op='cat', conv_glimpses=False."""
    k1, k2, k3 = jax.random.split(key, 3)

    def kaiming(k, fan_in, fan_out):
        std = jnp.sqrt(2.0 / fan_in)
        # stored as (in, out): equivalent to nn.Linear (out, in) then x @ W.T
        return std * jax.random.normal(k, (fan_in, fan_out), dtype=jnp.float32)

    w_loc = kaiming(k1, 2, loc_g_size)
    w_g = kaiming(k2, unrolled_size, glimpse_g_size)
    w_out = kaiming(k3, loc_g_size + glimpse_g_size, glimpse_net_size)

    return {
        "w_loc": w_loc,
        "b_loc": jnp.zeros((1, loc_g_size), jnp.float32),
        "w_g": w_g,
        "b_g": jnp.zeros((1, glimpse_g_size), jnp.float32),
        "w_out_loc": w_out[:loc_g_size, :],
        "w_out_g": w_out[loc_g_size:, :],
        "b_out": jnp.zeros((1, glimpse_net_size), jnp.float32),
    }


def prepare_params(params, compute_dtype=jnp.float32):
    """Cast the MXU-facing weights to the compute dtype ONCE (store them that way)
    so the kernel streams them without per-step casts. The tiny location weight
    (VPU branch) and all biases (f32 epilogue) stay f32."""
    p = dict(params)
    for k in ("w_g", "w_out_loc", "w_out_g"):
        p[k] = params[k].astype(compute_dtype)
    return p


def _reference(locs, glimpses, params):
    B = glimpses.shape[0]
    gflat = glimpses.reshape(B, -1).astype(jnp.float32)
    loc_rep = jnp.maximum(locs @ params["w_loc"] + params["b_loc"], 0.0)
    g_rep = jnp.maximum(
        gflat @ params["w_g"].astype(jnp.float32) + params["b_g"], 0.0
    )
    return jnp.maximum(
        loc_rep @ params["w_out_loc"].astype(jnp.float32)
        + g_rep @ params["w_out_g"].astype(jnp.float32)
        + params["b_out"],
        0.0,
    )


# --------------------------------- main ---------------------------------------
if __name__ == "__main__":
    # Small config consistent with the module:
    #   in_channels=2, glimpse_sizes=[4, 8] -> num_glimpses=2, channel_depth=4
    #   sensor_size=8 -> glimpses are (B, 4, 8, 8); unrolled = 8*8*4 = 256
    batch = 2
    in_channels = 2
    num_glimpses = 2
    sensor_size = 8
    channel_depth = in_channels * num_glimpses
    unrolled_size = sensor_size * sensor_size * channel_depth
    loc_g_size = 32
    glimpse_g_size = 32
    glimpse_net_size = 32

    key = jax.random.PRNGKey(0)
    k_loc, k_glimpse, k_params, k_big = jax.random.split(key, 4)

    locs = jax.random.uniform(
        k_loc, (batch, 2), dtype=jnp.float32, minval=-1.0, maxval=1.0
    )
    glimpses = jax.random.uniform(
        k_glimpse, (batch, channel_depth, sensor_size, sensor_size), dtype=jnp.float32
    )

    params = init_params(
        k_params,
        unrolled_size=unrolled_size,
        loc_g_size=loc_g_size,
        glimpse_g_size=glimpse_g_size,
        glimpse_net_size=glimpse_net_size,
    )

    # --- f32 path at the module's demo shape (single full-extent block): exact ---
    output, glimpses_out = glimpse_network_forward(locs, glimpses, params)
    output = jax.block_until_ready(output)
    ref = _reference(locs, glimpses, params)
    assert output.shape == (batch, glimpse_net_size)
    assert jnp.allclose(output, ref, atol=1e-5, rtol=1e-5)

    # --- larger batch: exercises the adaptive batch grid (multiple steps/core)
    #     with bf16 weights + bf16-streamed activations; looser tolerance since
    #     the inputs themselves are bf16. ---
    big_b = 512
    locs_big = jax.random.uniform(
        jax.random.fold_in(k_big, 0), (big_b, 2),
        dtype=jnp.float32, minval=-1.0, maxval=1.0,
    )
    glimpses_big = jax.random.uniform(
        jax.random.fold_in(k_big, 1),
        (big_b, channel_depth, sensor_size, sensor_size),
        dtype=jnp.float32,
    )
    params_bf16 = prepare_params(params, jnp.bfloat16)
    out_big, _ = glimpse_network_forward(locs_big, glimpses_big, params_bf16)
    out_big = jax.block_until_ready(out_big)
    ref_big = _reference(locs_big, glimpses_big, params)
    assert out_big.shape == (big_b, glimpse_net_size)
    assert jnp.allclose(out_big, ref_big, atol=5e-2, rtol=5e-2)

    print("KERNEL_OK")
</pallas_src>

<mosaic_0001>
module attributes {stable_mosaic.version = 11 : i64} {
  func.func @glimpse_network_kernel(%arg0: i32, %arg1: memref<2x2xf32, #tpu.memory_space<vmem>>, %arg2: memref<2x256xf32, #tpu.memory_space<vmem>>, %arg3: memref<2x32xf32, #tpu.memory_space<vmem>>, %arg4: memref<1x32xf32, #tpu.memory_space<vmem>>, %arg5: memref<256x32xf32, #tpu.memory_space<vmem>>, %arg6: memref<1x32xf32, #tpu.memory_space<vmem>>, %arg7: memref<32x32xf32, #tpu.memory_space<vmem>>, %arg8: memref<32x32xf32, #tpu.memory_space<vmem>>, %arg9: memref<1x32xf32, #tpu.memory_space<vmem>>, %arg10: memref<2x32xf32, #tpu.memory_space<vmem>>) attributes {dimension_semantics = [#tpu.dimension_semantics<parallel>], iteration_bounds = array<i64: 1>, scalar_prefetch = 0 : i64, scratch_operands = 0 : i64, tpu.core_type = #tpu.core_type<tc>, window_params = [{transform_indices = @transform_0, window_bounds = array<i64: 2, 2>}, {transform_indices = @transform_1, window_bounds = array<i64: 2, 256>}, {pipeline_mode = #tpu.pipeline_mode<synchronous>, transform_indices = @transform_2, window_bounds = array<i64: 2, 32>}, {pipeline_mode = #tpu.pipeline_mode<synchronous>, transform_indices = @transform_3, window_bounds = array<i64: 1, 32>}, {pipeline_mode = #tpu.pipeline_mode<synchronous>, transform_indices = @transform_4, window_bounds = array<i64: 256, 32>}, {pipeline_mode = #tpu.pipeline_mode<synchronous>, transform_indices = @transform_5, window_bounds = array<i64: 1, 32>}, {pipeline_mode = #tpu.pipeline_mode<synchronous>, transform_indices = @transform_6, window_bounds = array<i64: 32, 32>}, {pipeline_mode = #tpu.pipeline_mode<synchronous>, transform_indices = @transform_7, window_bounds = array<i64: 32, 32>}, {pipeline_mode = #tpu.pipeline_mode<synchronous>, transform_indices = @transform_8, window_bounds = array<i64: 1, 32>}, {transform_indices = @transform_9, window_bounds = array<i64: 2, 32>}]} {
    %c0 = arith.constant 0 : index
    %c0_0 = arith.constant 0 : index
    %0 = vector.load %arg1[%c0, %c0_0] : memref<2x2xf32, #tpu.memory_space<vmem>>, vector<2x2xf32>
    %c0_1 = arith.constant 0 : index
    %c0_2 = arith.constant 0 : index
    %1 = vector.load %arg3[%c0_1, %c0_2] : memref<2x32xf32, #tpu.memory_space<vmem>>, vector<2x32xf32>
    %2 = vector.extract_strided_slice %0 {offsets = [0, 0], sizes = [2, 1], strides = [1, 1]} : vector<2x2xf32> to vector<2x1xf32>
    %3 = vector.extract_strided_slice %1 {offsets = [0, 0], sizes = [1, 32], strides = [1, 1]} : vector<2x32xf32> to vector<1x32xf32>
    %4 = vector.broadcast %2 : vector<2x1xf32> to vector<2x32xf32>
    %5 = vector.broadcast %3 : vector<1x32xf32> to vector<2x32xf32>
    %6 = arith.mulf %4, %5 : vector<2x32xf32>
    %7 = vector.extract_strided_slice %0 {offsets = [0, 1], sizes = [2, 1], strides = [1, 1]} : vector<2x2xf32> to vector<2x1xf32>
    %8 = vector.extract_strided_slice %1 {offsets = [1, 0], sizes = [1, 32], strides = [1, 1]} : vector<2x32xf32> to vector<1x32xf32>
    %9 = vector.broadcast %7 : vector<2x1xf32> to vector<2x32xf32>
    %10 = vector.broadcast %8 : vector<1x32xf32> to vector<2x32xf32>
    %11 = arith.mulf %9, %10 : vector<2x32xf32>
    %12 = arith.addf %6, %11 : vector<2x32xf32>
    %c0_3 = arith.constant 0 : index
    %c0_4 = arith.constant 0 : index
    %13 = vector.load %arg4[%c0_3, %c0_4] : memref<1x32xf32, #tpu.memory_space<vmem>>, vector<1x32xf32>
    %14 = vector.broadcast %13 : vector<1x32xf32> to vector<2x32xf32>
    %15 = arith.addf %12, %14 : vector<2x32xf32>
    %cst = arith.constant 0.000000e+00 : f32
    %16 = vector.broadcast %cst : f32 to vector<2x32xf32>
    %17 = arith.maximumf %15, %16 : vector<2x32xf32>
    %c0_5 = arith.constant 0 : index
    %c0_6 = arith.constant 0 : index
    %18 = vector.load %arg2[%c0_5, %c0_6] : memref<2x256xf32, #tpu.memory_space<vmem>>, vector<2x256xf32>
    %c0_7 = arith.constant 0 : index
    %c0_8 = arith.constant 0 : index
    %19 = vector.load %arg5[%c0_7, %c0_8] : memref<256x32xf32, #tpu.memory_space<vmem>>, vector<256x32xf32>
    %cst_9 = arith.constant dense<0.000000e+00> : vector<2x32xf32>
    %20 = tpu.matmul %18, %19, %cst_9 {dimension_numbers = #tpu.dot_dimension_numbers<[1], [0], [0], [1], [0, 0, 1, 1], [], []>} : vector<2x256xf32>, vector<256x32xf32>, vector<2x32xf32> -> vector<2x32xf32>
    %c0_10 = arith.constant 0 : index
    %c0_11 = arith.constant 0 : index
    %21 = vector.load %arg6[%c0_10, %c0_11] : memref<1x32xf32, #tpu.memory_space<vmem>>, vector<1x32xf32>
    %22 = vector.broadcast %21 : vector<1x32xf32> to vector<2x32xf32>
    %23 = arith.addf %20, %22 : vector<2x32xf32>
    %cst_12 = arith.constant 0.000000e+00 : f32
    %24 = vector.broadcast %cst_12 : f32 to vector<2x32xf32>
    %25 = arith.maximumf %23, %24 : vector<2x32xf32>
    %c0_13 = arith.constant 0 : index
    %c0_14 = arith.constant 0 : index
    %26 = vector.load %arg7[%c0_13, %c0_14] : memref<32x32xf32, #tpu.memory_space<vmem>>, vector<32x32xf32>
    %cst_15 = arith.constant dense<0.000000e+00> : vector<2x32xf32>
    %27 = tpu.matmul %17, %26, %cst_15 {dimension_numbers = #tpu.dot_dimension_numbers<[1], [0], [0], [1], [0, 0, 1, 1], [], []>} : vector<2x32xf32>, vector<32x32xf32>, vector<2x32xf32> -> vector<2x32xf32>
    %c0_16 = arith.constant 0 : index
    %c0_17 = arith.constant 0 : index
    %28 = vector.load %arg8[%c0_16, %c0_17] : memref<32x32xf32, #tpu.memory_space<vmem>>, vector<32x32xf32>
    %cst_18 = arith.constant dense<0.000000e+00> : vector<2x32xf32>
    %29 = tpu.matmul %25, %28, %cst_18 {dimension_numbers = #tpu.dot_dimension_numbers<[1], [0], [0], [1], [0, 0, 1, 1], [], []>} : vector<2x32xf32>, vector<32x32xf32>, vector<2x32xf32> -> vector<2x32xf32>
    %30 = arith.addf %27, %29 : vector<2x32xf32>
    %c0_19 = arith.constant 0 : index
    %c0_20 = arith.constant 0 : index
    %31 = vector.load %arg9[%c0_19, %c0_20] : memref<1x32xf32, #tpu.memory_space<vmem>>, vector<1x32xf32>
    %32 = vector.broadcast %31 : vector<1x32xf32> to vector<2x32xf32>
    %33 = arith.addf %30, %32 : vector<2x32xf32>
    %cst_21 = arith.constant 0.000000e+00 : f32
    %34 = vector.broadcast %cst_21 : f32 to vector<2x32xf32>
    %35 = arith.maximumf %33, %34 : vector<2x32xf32>
    %c0_22 = arith.constant 0 : index
    %c0_23 = arith.constant 0 : index
    %36 = vector.load %arg10[%c0_22, %c0_23] : memref<2x32xf32, #tpu.memory_space<vmem>>, vector<2x32xf32>
    tpu.vector_store %arg10[%c0_22, %c0_23], %35 {strides = array<i32>} : memref<2x32xf32, #tpu.memory_space<vmem>>, vector<2x32xf32>,
    return
  }
  func.func @transform_0(%arg0: i32) -> (i32, i32) {
    %c0_i32 = arith.constant 0 : i32
    %c0_i32_0 = arith.constant 0 : i32
    return %arg0, %c0_i32 : i32, i32
  }
  func.func @transform_1(%arg0: i32) -> (i32, i32) {
    %c0_i32 = arith.constant 0 : i32
    %c0_i32_0 = arith.constant 0 : i32
    return %arg0, %c0_i32 : i32, i32
  }
  func.func @transform_2(%arg0: i32) -> (i32, i32) {
    %c0_i32 = arith.constant 0 : i32
    %c0_i32_0 = arith.constant 0 : i32
    %c0_i32_1 = arith.constant 0 : i32
    return %c0_i32, %c0_i32_0 : i32, i32
  }
  func.func @transform_3(%arg0: i32) -> (i32, i32) {
    %c0_i32 = arith.constant 0 : i32
    %c0_i32_0 = arith.constant 0 : i32
    %c0_i32_1 = arith.constant 0 : i32
    return %c0_i32, %c0_i32_0 : i32, i32
  }
  func.func @transform_4(%arg0: i32) -> (i32, i32) {
    %c0_i32 = arith.constant 0 : i32
    %c0_i32_0 = arith.constant 0 : i32
    %c0_i32_1 = arith.constant 0 : i32
    return %c0_i32, %c0_i32_0 : i32, i32
  }
  func.func @transform_5(%arg0: i32) -> (i32, i32) {
    %c0_i32 = arith.constant 0 : i32
    %c0_i32_0 = arith.constant 0 : i32
    %c0_i32_1 = arith.constant 0 : i32
    return %c0_i32, %c0_i32_0 : i32, i32
  }
  func.func @transform_6(%arg0: i32) -> (i32, i32) {
    %c0_i32 = arith.constant 0 : i32
    %c0_i32_0 = arith.constant 0 : i32
    %c0_i32_1 = arith.constant 0 : i32
    return %c0_i32, %c0_i32_0 : i32, i32
  }
  func.func @transform_7(%arg0: i32) -> (i32, i32) {
    %c0_i32 = arith.constant 0 : i32
    %c0_i32_0 = arith.constant 0 : i32
    %c0_i32_1 = arith.constant 0 : i32
    return %c0_i32, %c0_i32_0 : i32, i32
  }
  func.func @transform_8(%arg0: i32) -> (i32, i32) {
    %c0_i32 = arith.constant 0 : i32
    %c0_i32_0 = arith.constant 0 : i32
    %c0_i32_1 = arith.constant 0 : i32
    return %c0_i32, %c0_i32_0 : i32, i32
  }
  func.func @transform_9(%arg0: i32) -> (i32, i32) {
    %c0_i32 = arith.constant 0 : i32
    %c0_i32_0 = arith.constant 0 : i32
    return %arg0, %c0_i32 : i32, i32
  }
}

</mosaic_0001>

<bundles_post_ra>
// kernel: glimpse_network_forward.1
= control target key start
LH: loop header
LB: loop body
LE: loop exit
PB: predicated region body
PF: predicated region fallthrough
CT: control target
= control target key end

     0   :  { %v515_v7 = vmov 0   ;;  %s727_s0 = inlined_call_operand.vmem [shape: f32[2,2], index: 0, kind: input, shape index: {}]   ;;  %s728_s1 = inlined_call_operand.vmem [shape: f32[2,256], index: 1, kind: input, shape index: {}]   ;;  %s729_s2 = inlined_call_operand.vmem [shape: f32[2,32], index: 2, kind: input, shape index: {}]   ;;  %s730_s3 = inlined_call_operand.vmem [shape: f32[1,32], index: 3, kind: input, shape index: {}]   ;;  %s731_s4 = inlined_call_operand.vmem [shape: f32[256,32], index: 4, kind: input, shape index: {}]   ;;  %s732_s5 = inlined_call_operand.vmem [shape: f32[1,32], index: 5, kind: input, shape index: {}]   ;;  %s733_s6 = inlined_call_operand.vmem [shape: f32[32,32], index: 6, kind: input, shape index: {}]   ;;  %s734_s7 = inlined_call_operand.vmem [shape: f32[32,32], index: 7, kind: input, shape index: {}]   ;;  %s735_s8 = inlined_call_operand.vmem [shape: f32[1,32], index: 8, kind: input, shape index: {}]   ;;  %s736_s9 = inlined_call_operand.hbm [shape: f32[2,32], index: 9, kind: output, shape index: {}]  }
   0x1   :  { %v81_v0 = vld [vmem:[%s731_s4 + $0x80] sm:$0xff]  ;;  %v82_v1 = vld [vmem:[%s731_s4 + $0x88] sm:$0xff]  ;;  %v83_v5 = vld [vmem:[%s731_s4 + $0x90] sm:$0xff]  ;;  %489 = vset.pattern.permute.xlu0 %v515_v7 }
   0x2   :  { %v65_v2 = vld [vmem:[%s731_s4] sm:$0xff]  ;;  %v439_v3 = vpack.c.bf16 %v82_v1, %v81_v0  ;;  %v66_v4 = vld [vmem:[%s731_s4 + $0x8] sm:$0xff]  ;;  %v84_v6 = vld [vmem:[%s731_s4 + $0x98] sm:$0xff] }
   0x3   :  { %v441_v8 = vpack.c.bf16 %v66_v4, %v65_v2  ;;  %v443_v9 = vpack.c.bf16 %v84_v6, %v83_v5  ;;  %v67_v10 = vld [vmem:[%s731_s4 + $0x10] sm:$0xff]  ;;  %v68_v11 = vld [vmem:[%s731_s4 + $0x18] sm:$0xff]  ;;  %v85_v12 = vld [vmem:[%s731_s4 + $0xa0] sm:$0xff] }
   0x4   :  { %440 = vmatprep.subr.bf16.mxu0 %v439_v3  ;;  %v86_v13 = vld [vmem:[%s731_s4 + $0xa8] sm:$0xff]  ;;  %v445_v14 = vpack.c.bf16 %v68_v11, %v67_v10  ;;  %v69_v16 = vld [vmem:[%s731_s4 + $0x20] sm:$0xff]  ;;  %v87_v18 = vld [vmem:[%s731_s4 + $0xb0] sm:$0xff] }
   0x5   :  { %442 = vmatpush3.bf16.msra.mxu0 %v441_v8  ;;  %v447_v15 = vpack.c.bf16 %v86_v13, %v85_v12  ;;  %v70_v17 = vld [vmem:[%s731_s4 + $0x28] sm:$0xff]  ;;  %v88_v19 = vld [vmem:[%s731_s4 + $0xb8] sm:$0xff]  ;;  %v71_v22 = vld [vmem:[%s731_s4 + $0x30] sm:$0xff] }
   0x6   :  { %444 = vmatprep.subr.bf16.mxu0 %v443_v9  ;;  %v449_v20 = vpack.c.bf16 %v70_v17, %v69_v16  ;;  %v451_v21 = vpack.c.bf16 %v88_v19, %v87_v18  ;;  %v72_v23 = vld [vmem:[%s731_s4 + $0x38] sm:$0xff]  ;;  %v89_v24 = vld [vmem:[%s731_s4 + $0xc0] sm:$0xff]  ;;  %v90_v25 = vld [vmem:[%s731_s4 + $0xc8] sm:$0xff] }
   0x7   :  { %v368_v26 = vld.sshfl [vmem:[%s728_s1] sm:$0x33 pattern:$0x76325410] }
   0x8   :  { %v112_v27 = vcombine.high %v368_v26, %v368_v26  ;;  %v33_v28 = vld [vmem:[%s727_s0] sm:$0x3] }
   0x9   :  { %446 = vmatpush3.bf16.msra.mxu0 %v445_v14 }
   0xa   :  { %448 = vmatprep.subr.bf16.mxu0 %v447_v15 }
   0xb   :  { %14 = vsyncpa [#allocation3], 0  ;;  %v453_v29 = vpack.c.bf16 %v72_v23, %v71_v22  ;;  %37 = vperm.xlu0 %489, %v33_v28   ;;  %v455_v30 = vpack.c.bf16 %v90_v25, %v89_v24  ;;  %v73_v31 = vld [vmem:[%s731_s4 + $0x40] sm:$0xff]  ;;  %v74_v32 = vld [vmem:[%s731_s4 + $0x48] sm:$0xff]  ;;  %179 = vmatprep.mubr.f32.mxu0 %v112_v27  ;;  %v516_v35 = vmov 0.0|0.0   ;;  %v517_v37 = vmov 1  }
   0xc   :  { %v91_v33 = vld [vmem:[%s731_s4 + $0xd0] sm:$0xff]  ;;  %v92_v34 = vld [vmem:[%s731_s4 + $0xd8] sm:$0xff]  ;;  %471 = vmatprep.subr.bf16.mxu1 %v516_v35  ;;  %v457_v36 = vpack.c.bf16 %v74_v32, %v73_v31  ;;  %v93_v41 = vld [vmem:[%s731_s4 + $0xe0] sm:$0xff]  ;;  %vm518_vm0 = vmmov 0   ;;  %v519_v60 = vmov 0.0   ;;  %v40_v61 = vlaneseq }
   0xd   :  { %450 = vmatpush3.bf16.msra.mxu0 %v449_v20  ;;  %v459_v38 = vpack.c.bf16 %v92_v34, %v91_v33  ;;  %v75_v39 = vld [vmem:[%s731_s4 + $0x50] sm:$0xff]  ;;  %v76_v40 = vld [vmem:[%s731_s4 + $0x58] sm:$0xff]  ;;  %v94_v42 = vld [vmem:[%s731_s4 + $0xe8] sm:$0xff]  ;;  %425 = vmatprep.mubr.msk.f32.mxu1 %vm518_vm0, %v519_v60  ;;  %vm194_vm1 = vcmask 261120   ;;  %vm350_vm2 = vcmask 254976  }
   0xe   :  { %452 = vmatprep.subr.bf16.mxu0 %v451_v21  ;;  %v461_v43 = vpack.c.bf16 %v76_v40, %v75_v39  ;;  %v463_v44 = vpack.c.bf16 %v94_v42, %v93_v41  ;;  %v77_v45 = vld [vmem:[%s731_s4 + $0x60] sm:$0xff]  ;;  %v78_v46 = vld [vmem:[%s731_s4 + $0x68] sm:$0xff]  ;;  %v95_v47 = vld [vmem:[%s731_s4 + $0xf0] sm:$0xff]  ;;  %v41_v62 = vshrl.u32 %v40_v61, 7 }
   0xf   :  { %490 = vset.pattern.permute.xlu0 %v517_v37  ;;  %v96_v48 = vld [vmem:[%s731_s4 + $0xf8] sm:$0xff]  ;;  %v465_v49 = vpack.c.bf16 %v78_v46, %v77_v45  ;;  %v79_v51 = vld [vmem:[%s731_s4 + $0x70] sm:$0xff]  ;;  %v190_v54 = vld [vmem:[%s734_s7] sm:$0xff] }
  0x10   :  { %46 = vperm.xlu0 %490, %v33_v28   ;;  %v467_v50 = vpack.c.bf16 %v96_v48, %v95_v47  ;;  %v80_v52 = vld [vmem:[%s731_s4 + $0x78] sm:$0xff]  ;;  %v191_v55 = vld [vmem:[%s734_s7 + $0x8] sm:$0xff]  ;;  %v192_v57 = vld [vmem:[%s734_s7 + $0x10] sm:$0xff]  ;;  %v42_v0 = vsub.s32 0, %v41_v62  ;;  %v51_v1 = vsub.s32 1, %v41_v62 }
  0x11   :  { %454 = vmatpush3.bf16.msra.mxu0 %v453_v29  ;;  %v469_v53 = vpack.c.bf16 %v80_v52, %v79_v51  ;;  %v472_v56 = vpack.c.bf16 %v191_v55, %v190_v54  ;;  %v193_v58 = vld [vmem:[%s734_s7 + $0x18] sm:$0xff]  ;;  %v34_v2 = vld [vmem:[%s729_s2] sm:$0x3]  ;;  %v187_v13 = vld [vmem:[%s733_s6 + $0x8] sm:$0xff] }
  0x12   :  { %456 = vmatprep.subr.bf16.mxu0 %v455_v30  ;;  %v475_v59 = vpack.c.bf16 %v193_v58, %v192_v57  ;;  %v43_v3 = vrot.slane %v34_v2, %v42_v0  ;;  %v52_v4 = vrot.slane %v34_v2, %v51_v1  ;;  %v367_v7 = vld [vmem:[%s732_s5] ss:$0 sm:$0xff]  ;;  %v188_v18 = vld [vmem:[%s733_s6 + $0x10] sm:$0xff]  ;;  %v189_v19 = vld [vmem:[%s733_s6 + $0x18] sm:$0xff] }
  0x13   :  { %473 = vmatpush3.bf16.msra.mxu1 %v472_v56  ;;  %v186_v12 = vld [vmem:[%s733_s6] sm:$0xff]  ;;  %v481_v21 = vpack.c.bf16 %v189_v19, %v188_v18 }
  0x14   :  { %474 = vmatprep.subr.bf16.mxu1 %v516_v35  ;;  %v478_v15 = vpack.c.bf16 %v187_v13, %v186_v12  ;;  %v366_v20 = vld [vmem:[%s730_s3] ss:$0 sm:$0xff]  ;;  %s520_s3 = smov [#allocation2]  }
  0x15   :  { %458 = vmatpush3.bf16.msra.mxu0 %v457_v36  ;;  %v371_v27 = vld [vmem:[%s735_s8] ss:$0 sm:$0xff]  ;;  %s358_s29 = sshll.u32 %s520_s3, 4  ;;  %s359_s29 = int_to_ptr.vmem [resolvable:$true] %s358_s29 }
  0x16   :  { %460 = vmatprep.subr.bf16.mxu0 %v459_v38  ;;  %s491_s30 = scalar_lea.vmem %s359_s29, 32  ;;  %p496_p1 = scmp.lt.s32.totalorder %s359_s29, %s359_s29 }
  0x17   :  { %476 = vmatpush3.bf16.msra.mxu1 %v475_v59  ;;  %p492_p0 = scmp.ne.s32.totalorder %s359_s29, %s491_s30  ;;  %p497_p2 = scmp.lt.s32.totalorder %s491_s30, %s491_s30 }
  0x18   :  { %477 = vmatprep.subr.bf16.mxu1 %v516_v35 }
  0x19   :  { %462 = vmatpush3.bf16.msra.mxu0 %v461_v43  ;;  %p498_p3 = por %p497_p2, %p496_p1 }
  0x1a   :  { %464 = vmatprep.subr.bf16.mxu0 %v463_v44 }
  0x1b   :  { %p499_p4 = pnand %p498_p3, %p492_p0 }
  0x1d   :  { %466 = vmatpush3.bf16.msra.mxu0 %v465_v49 }
  0x1e   :  { %468 = vmatprep.subr.bf16.mxu0 %v467_v50 }
  0x21   :  { %470 = vmatpush3.bf16.msra.mxu0 %v469_v53 }
  0x24   :  { %180 = vmatmul.mubr.f32.vlgmr.msra.gmra.mrb[0].mxu0 %v368_v26 }
  0x8a   :  { %v38_v63 = vpop.permute.xlu0 %37 }
  0x8b   :  { %v44_v9 = vmul.f32 %v43_v3, %v38_v63 }
  0x8f   :  { %v47_v5 = vpop.permute.xlu0 %46 }
  0x90   :  { %v53_v11 = vmul.f32 %v52_v4, %v47_v5 }
  0x92   :  { %v54_v17 = vadd.f32 %v53_v11, %v44_v9 }
  0x94   :  { %v62_v22 = vadd.f32 %v366_v20, %v54_v17 }
  0x96   :  { %v63_v23 = vmax.f32 %v62_v22, 0.0 }
  0xf7   :  { %v404_v6 = vpop.f32.mrb[0].mxu0 }
  0xf8   :  { %v405_v8 = vpop.f32.mrb[1].mxu0 }
  0xf9   :  { %v406_v10 = vadd.f32 %v405_v8, %v404_v6 }
  0xfb   :  { %v182_v14 = vadd.f32 %v406_v10, %v367_v7 }
  0xfd   :  { %v185_v16 = vmax.f32 %v182_v14, 0.0 }
  0xff   :  { %426 = vmatmul.mubr.msk.f32.vlgmr.msra.gmra.mrb[0].mxu1 %vm194_vm1, %v185_v16 }
 0x100   :  { %479 = vmatpush3.bf16.msra.mxu1 %v478_v15  ;;  %436 = vmatprep.mubr.msk.f32.mxu1 %vm518_vm0, %v519_v60 }
 0x101   :  { %480 = vmatprep.subr.bf16.mxu1 %v516_v35 }
 0x104   :  { %482 = vmatpush3.bf16.msra.mxu1 %v481_v21 }
 0x107   :  { %437 = vmatmul.mubr.msk.f32.vlgmr.msra.gmra.mrb[2].mxu1 %vm194_vm1, %v63_v23 }
 0x1d2   :  { %v264_v24 = vpop.f32.mrb[0].mxu1 }
 0x1d3   :  { %v427_v25 = vpop.f32.mrb[1].mxu1 }
 0x1da   :  { %v337_v26 = vpop.f32.mrb[2].mxu1 }
 0x1db   :  { %v338_v28 = vadd.f32 %v337_v26, %v264_v24  ;;  %v438_v29 = vpop.f32.mrb[3].mxu1 }
 0x1dd   :  { %v348_v30 = vadd.f32 %v371_v27, %v338_v28 }
 0x1df   :  { %v349_v31 = vmax.f32 %v348_v30, 0.0 }
 0x1e1   :  { %351 = vst.msk [vmem:[#allocation2] sm:$0x3] %vm350_vm2, %v349_v31 }
 0x1e2   :  { %502 = shalt.err (!%p499_p4)
}
 0x1e3   :  { %s503_s8 = scalar_lea.hbm %s736_s9, 32 }
 0x1e4   :  { %p504_p5 = scmp.ne.s32.totalorder %s736_s9, %s503_s8  ;;  %p507_p6 = scmp.lt.u32.totalorder %s503_s8, %s736_s9 }
 0x1e6   :  { %p509_p7 = pnand %p507_p6, %p504_p5 }
 0x1e8   :  { %512 = shalt.err (!%p509_p7)
}
 0x1e9   :  { %361 = dma.vmem_to_hbm [thread:$0]  %s359_s29, 32, %s736_s9, [#allocation3]  }
 0x1ea   :  { %513 = dma.done.wait [#allocation3], 32  }
 0x1eb   :  { %514 = vsyncadd [#allocation3], 4294967264 }
 0x1ec   :  { %365 = vsyncpa [#allocation3], 1 }

</bundles_post_ra>
